<compile_context>
chip_gen: v7x
topology: tpu7x:2x2x1
jax: 0.10.0
libtpu: 0.0.40
codegen_flags: <defaults>
</compile_context>

<pallas_src>
import functools
import math

import numpy as np

import jax
import jax.numpy as jnp
from jax.experimental import pallas as pl
from jax.experimental.pallas import tpu as pltpu

_LANES = 128
_MAX_TILE_ROWS = 3072            # 3072 * 128 * 4B = 1.5 MiB per input per buffer


def _sq_err_sum_kernel(p_ref, g_ref, out_ref, acc_ref, *, row_block):
    """Accumulate raw squared errors, folded to a (row_block, 128) accumulator."""
    k = pl.program_id(1)                       # reduction axis ("arbitrary")

    @pl.when(k == 0)
    def _():
        acc_ref[...] = jnp.zeros_like(acc_ref)

    # Cast in VMEM (free on the VPU); inputs keep their HBM dtype.
    diff = p_ref[...].astype(jnp.float32) - g_ref[...].astype(jnp.float32)
    sq = diff * diff
    rows, lanes = sq.shape
    # Fold the tile onto the vreg-shaped accumulator with plain VPU adds;
    # the single cross-lane reduce happens outside the kernel.
    acc_ref[...] += jnp.sum(sq.reshape(rows // row_block, row_block, lanes),
                            axis=0)

    @pl.when(k == pl.num_programs(1) - 1)
    def _():
        out_ref[...] = acc_ref[...]            # lane-dense (row_block, 128) store


def weighted_mse_pose_loss(poses, gts, angle_weight=100.0):
    """angle_weight * MSE(poses[...,:3], gts[...,:3]) + MSE(poses[...,3:], gts[...,3:])."""
    assert poses.shape == gts.shape
    B, S, D = poses.shape
    assert D > 3
    N = B * S
    total = N * D

    # Row-block R: smallest multiple of 8 sublanes with R*128 % D == 0, so the
    # channel pattern of every (R, 128) slab of the flat stream is identical.
    R = math.lcm(8, D // math.gcd(D, _LANES))          # 24 for D = 6

    max_rows = max((_MAX_TILE_ROWS // R) * R, R)

    rows = pl.cdiv(total, _LANES)
    rows = ((rows + R - 1) // R) * R                   # multiple of R

    if rows <= max_rows:
        rows_per_tile, P, K = rows, 1, 1               # tiny problem: one block
    else:
        rows_per_tile = max_rows
        tiles = pl.cdiv(rows, rows_per_tile)
        P = 2 if tiles >= 2 else 1                     # shard tiles across TCs (v7x)
        K = pl.cdiv(tiles, P)

    padded_rows = P * K * rows_per_tile
    pad = padded_rows * _LANES - total

    # No wrapper-side dtype cast; zero padding contributes zero squared error.
    p_flat = poses.reshape(-1)
    g_flat = gts.reshape(-1)
    if pad:
        p_flat = jnp.pad(p_flat, (0, pad))
        g_flat = jnp.pad(g_flat, (0, pad))
    p2 = p_flat.reshape(padded_rows, _LANES)
    g2 = g_flat.reshape(padded_rows, _LANES)

    kernel = functools.partial(_sq_err_sum_kernel, row_block=R)

    partial_sums = pl.pallas_call(
        kernel,
        out_shape=jax.ShapeDtypeStruct((P * R, _LANES), jnp.float32),
        grid_spec=pltpu.PrefetchScalarGridSpec(
            num_scalar_prefetch=0,
            grid=(P, K),
            in_specs=[
                pl.BlockSpec((rows_per_tile, _LANES), lambda p, k: (p * K + k, 0)),
                pl.BlockSpec((rows_per_tile, _LANES), lambda p, k: (p * K + k, 0)),
            ],
            out_specs=pl.BlockSpec((R, _LANES), lambda p, k: (p, 0)),
            scratch_shapes=[pltpu.VMEM((R, _LANES), jnp.float32)],
        ),
        compiler_params=pltpu.CompilerParams(
            dimension_semantics=("parallel", "arbitrary"),
        ),
    )(p2, g2)

    # Per-position weights: flat element (r, l) of any slab has channel
    # (r*128 + l) % D; angles (< 3) weighted by angle_weight / n_angle,
    # translations by 1 / n_trans.  Tiny epilogue on the (P*R, 128) partials.
    r_idx = np.arange(R)[:, None]
    l_idx = np.arange(_LANES)[None, :]
    chan = (r_idx * _LANES + l_idx) % D
    w = np.where(chan < 3,
                 float(angle_weight) / float(N * 3),
                 1.0 / float(N * (D - 3))).astype(np.float32)
    w = jnp.asarray(w)

    return jnp.sum(partial_sums.reshape(P, R, _LANES) * w[None, :, :])


def _reference(poses, gts, angle_weight=100.0):
    angle_loss = jnp.mean((poses[:, :, :3] - gts[:, :, :3]) ** 2)
    trans_loss = jnp.mean((poses[:, :, 3:] - gts[:, :, 3:]) ** 2)
    return angle_weight * angle_loss + trans_loss


if __name__ == "__main__":
    key = jax.random.PRNGKey(0)

    # Small shape matching the module's (batch, seq, 6-DoF pose) layout.
    k1, k2 = jax.random.split(key)
    B, S, D = 2, 8, 6
    poses = jax.random.normal(k1, (B, S, D), dtype=jnp.float32)
    gts = jax.random.normal(k2, (B, S, D), dtype=jnp.float32)

    loss = jax.block_until_ready(weighted_mse_pose_loss(poses, gts, 100.0))
    ref = _reference(poses, gts, 100.0)
    assert jnp.allclose(loss, ref, rtol=1e-5, atol=1e-5), (loss, ref)

    # Larger shape exercising multi-tile accumulation, tail zero-padding and
    # the 2-way core-parallel grid split.
    k3, k4 = jax.random.split(k1)
    B2, S2 = 2, 70000
    poses2 = jax.random.normal(k3, (B2, S2, D), dtype=jnp.float32)
    gts2 = jax.random.normal(k4, (B2, S2, D), dtype=jnp.float32)

    loss2 = jax.block_until_ready(weighted_mse_pose_loss(poses2, gts2, 100.0))
    ref2 = _reference(poses2, gts2, 100.0)
    assert jnp.allclose(loss2, ref2, rtol=1e-4, atol=1e-5), (loss2, ref2)

    print("KERNEL_OK")
</pallas_src>

<mosaic_0001>
module attributes {stable_mosaic.version = 11 : i64} {
  func.func @_sq_err_sum_kernel(%arg0: i32, %arg1: i32, %arg2: memref<24x128xf32, #tpu.memory_space<vmem>>, %arg3: memref<24x128xf32, #tpu.memory_space<vmem>>, %arg4: memref<24x128xf32, #tpu.memory_space<vmem>>, %arg5: memref<24x128xf32, #tpu.memory_space<vmem>>) attributes {dimension_semantics = [#tpu.dimension_semantics<parallel>, #tpu.dimension_semantics<arbitrary>], iteration_bounds = array<i64: 1, 1>, scalar_prefetch = 0 : i64, scratch_operands = 1 : i64, tpu.core_type = #tpu.core_type<tc>, window_params = [{transform_indices = @transform_0, window_bounds = array<i64: 24, 128>}, {transform_indices = @transform_1, window_bounds = array<i64: 24, 128>}, {transform_indices = @transform_2, window_bounds = array<i64: 24, 128>}]} {
    %c0_i32 = arith.constant 0 : i32
    %0 = arith.cmpi eq, %arg1, %c0_i32 : i32
    %1 = arith.extui %0 : i1 to i32
    %c0_i32_0 = arith.constant 0 : i32
    %2 = arith.cmpi ne, %1, %c0_i32_0 : i32
    scf.if %2 {
      %cst_10 = arith.constant 0.000000e+00 : f32
      %15 = vector.broadcast %cst_10 : f32 to vector<24x128xf32>
      %c0_11 = arith.constant 0 : index
      %c0_12 = arith.constant 0 : index
      %16 = vector.load %arg5[%c0_11, %c0_12] : memref<24x128xf32, #tpu.memory_space<vmem>>, vector<24x128xf32>
      tpu.vector_store %arg5[%c0_11, %c0_12], %15 {strides = array<i32>} : memref<24x128xf32, #tpu.memory_space<vmem>>, vector<24x128xf32>,
    } else {
    }
    %c0 = arith.constant 0 : index
    %c0_1 = arith.constant 0 : index
    %3 = vector.load %arg2[%c0, %c0_1] : memref<24x128xf32, #tpu.memory_space<vmem>>, vector<24x128xf32>
    %c0_2 = arith.constant 0 : index
    %c0_3 = arith.constant 0 : index
    %4 = vector.load %arg3[%c0_2, %c0_3] : memref<24x128xf32, #tpu.memory_space<vmem>>, vector<24x128xf32>
    %5 = arith.subf %3, %4 : vector<24x128xf32>
    %6 = arith.mulf %5, %5 : vector<24x128xf32>
    %c0_4 = arith.constant 0 : index
    %c0_5 = arith.constant 0 : index
    %7 = vector.load %arg5[%c0_4, %c0_5] : memref<24x128xf32, #tpu.memory_space<vmem>>, vector<24x128xf32>
    %8 = vector.shape_cast %6 : vector<24x128xf32> to vector<1x24x128xf32>
    %cst = arith.constant dense<0.000000e+00> : vector<24x128xf32>
    %9 = vector.multi_reduction <add>, %8, %cst [0] : vector<1x24x128xf32> to vector<24x128xf32>
    %10 = arith.addf %7, %9 : vector<24x128xf32>
    %c0_6 = arith.constant 0 : index
    %c0_7 = arith.constant 0 : index
    %11 = vector.load %arg5[%c0_6, %c0_7] : memref<24x128xf32, #tpu.memory_space<vmem>>, vector<24x128xf32>
    tpu.vector_store %arg5[%c0_6, %c0_7], %10 {strides = array<i32>} : memref<24x128xf32, #tpu.memory_space<vmem>>, vector<24x128xf32>,
    %c0_i32_8 = arith.constant 0 : i32
    %12 = arith.cmpi eq, %arg1, %c0_i32_8 : i32
    %13 = arith.extui %12 : i1 to i32
    %c0_i32_9 = arith.constant 0 : i32
    %14 = arith.cmpi ne, %13, %c0_i32_9 : i32
    scf.if %14 {
      %c0_10 = arith.constant 0 : index
      %c0_11 = arith.constant 0 : index
      %15 = vector.load %arg5[%c0_10, %c0_11] : memref<24x128xf32, #tpu.memory_space<vmem>>, vector<24x128xf32>
      %c0_12 = arith.constant 0 : index
      %c0_13 = arith.constant 0 : index
      %16 = vector.load %arg4[%c0_12, %c0_13] : memref<24x128xf32, #tpu.memory_space<vmem>>, vector<24x128xf32>
      tpu.vector_store %arg4[%c0_12, %c0_13], %15 {strides = array<i32>} : memref<24x128xf32, #tpu.memory_space<vmem>>, vector<24x128xf32>,
    } else {
    }
    return
  }
  func.func @transform_0(%arg0: i32, %arg1: i32) -> (i32, i32) {
    %c1_i32 = arith.constant 1 : i32
    %0 = arith.muli %arg0, %c1_i32 : i32
    %1 = arith.addi %0, %arg1 : i32
    %c0_i32 = arith.constant 0 : i32
    %c0_i32_0 = arith.constant 0 : i32
    return %1, %c0_i32 : i32, i32
  }
  func.func @transform_1(%arg0: i32, %arg1: i32) -> (i32, i32) {
    %c1_i32 = arith.constant 1 : i32
    %0 = arith.muli %arg0, %c1_i32 : i32
    %1 = arith.addi %0, %arg1 : i32
    %c0_i32 = arith.constant 0 : i32
    %c0_i32_0 = arith.constant 0 : i32
    return %1, %c0_i32 : i32, i32
  }
  func.func @transform_2(%arg0: i32, %arg1: i32) -> (i32, i32) {
    %c0_i32 = arith.constant 0 : i32
    %c0_i32_0 = arith.constant 0 : i32
    return %arg0, %c0_i32 : i32, i32
  }
}

</mosaic_0001>

<bundles_post_ra>
// kernel: tpu_custom_call.1
= control target key start
LH: loop header
LB: loop body
LE: loop exit
PB: predicated region body
PF: predicated region fallthrough
CT: control target
= control target key end

     0   :  { %7 = vsyncpa [#allocation4], 0  ;;  %s252_s0 = inlined_call_operand.hbm [shape: f32[24,128], index: 0, kind: input, shape index: {}]   ;;  %s253_s1 = inlined_call_operand.hbm [shape: f32[24,128], index: 1, kind: input, shape index: {}]   ;;  %s254_s2 = inlined_call_operand.hbm [shape: f32[24,128], index: 2, kind: output, shape index: {}]  }
   0x1   :  { %8 = vsyncpa [#allocation7], 0 }
   0x2   :  { %9 = vsyncpa [#allocation5], 0  ;;  %s187_s9 = smov [#allocation3]   ;;  %s115_s13 = scalar_lea.hbm %s252_s0, 384 }
   0x3   :  { %s19_s10 = sshll.u32 %s187_s9, 4  ;;  %p116_p0 = scmp.ne.s32.totalorder %s252_s0, %s115_s13  ;;  %s20_s10 = int_to_ptr.vmem [resolvable:$true] %s19_s10 }
   0x4   :  { %p119_p1 = scmp.lt.u32.totalorder %s115_s13, %s252_s0 }
   0x6   :  { %p121_p2 = pnand %p119_p1, %p116_p0 }
   0x8   :  { %124 = shalt.err (!%p121_p2)
}
   0x9   :  { %s125_s18 = scalar_lea.vmem %s20_s10, 384  ;;  %p130_p4 = scmp.lt.s32.totalorder %s20_s10, %s20_s10 }
   0xa   :  { %p126_p3 = scmp.ne.s32.totalorder %s20_s10, %s125_s18  ;;  %p131_p5 = scmp.lt.s32.totalorder %s125_s18, %s125_s18 }
   0xc   :  { %p132_p6 = por %p131_p5, %p130_p4 }
   0xe   :  { %p133_p7 = pnand %p132_p6, %p126_p3 }
  0x10   :  { %136 = shalt.err (!%p133_p7)
}
  0x11   :  { %s188_s19 = smov 128   ;;  %s189_s20 = smov 8  }
  0x12   :  { %25 = dma.hbm_to_vmem [thread:$0]  %s252_s0, 384, %s20_s10, [#allocation4], %s188_s19, %s188_s19, %s189_s20  }
  0x13   :  { %s190_s23 = smov [#allocation6]   ;;  %s137_s27 = scalar_lea.hbm %s253_s1, 384 }
  0x14   :  { %s35_s24 = sshll.u32 %s190_s23, 4  ;;  %p138_p8 = scmp.ne.s32.totalorder %s253_s1, %s137_s27  ;;  %s36_s24 = int_to_ptr.vmem [resolvable:$true] %s35_s24 }
  0x15   :  { %p141_p9 = scmp.lt.u32.totalorder %s137_s27, %s253_s1 }
  0x17   :  { %p143_p10 = pnand %p141_p9, %p138_p8 }
  0x19   :  { %146 = shalt.err (!%p143_p10)
}
  0x1a   :  { %s147_s4 = scalar_lea.vmem %s36_s24, 384  ;;  %p152_p12 = scmp.lt.s32.totalorder %s36_s24, %s36_s24 }
  0x1b   :  { %p148_p11 = scmp.ne.s32.totalorder %s36_s24, %s147_s4  ;;  %p153_p13 = scmp.lt.s32.totalorder %s147_s4, %s147_s4 }
  0x1d   :  { %p154_p0 = por %p153_p13, %p152_p12 }
  0x1f   :  { %p155_p1 = pnand %p154_p0, %p148_p11 }
  0x21   :  { %158 = shalt.err (!%p155_p1)
}
  0x22   :  { %41 = dma.hbm_to_vmem [thread:$0]  %s253_s1, 384, %s36_s24, [#allocation7], %s188_s19, %s188_s19, %s189_s20  }
  0x23   :  { %181 = dma.done.wait [#allocation4], 384  }
  0x24   :  { %182 = vsyncadd [#allocation4], 4294966912 }
  0x25   :  { %183 = dma.done.wait [#allocation7], 384  }
  0x26   :  { %184 = vsyncadd [#allocation7], 4294966912  ;;  %v59_v0 = vld [vmem:[#allocation3] sm:$0xff]  ;;  %v62_v1 = vld [vmem:[#allocation6] sm:$0xff]  ;;  %s191_s6 = smov [#allocation8]  }
  0x27   :  { %v60_v2 = vld [vmem:[#allocation3 + $0x8] sm:$0xff]  ;;  %v65_v3 = vsub.f32 %v59_v0, %v62_v1  ;;  %v63_v4 = vld [vmem:[#allocation6 + $0x8] sm:$0xff]  ;;  %v61_v5 = vld [vmem:[#allocation3 + $0x10] sm:$0xff]  ;;  %s97_s7 = sshll.u32 %s191_s6, 4  ;;  %s98_s7 = int_to_ptr.vmem [resolvable:$true] %s97_s7 }
  0x28   :  { %v64_v6 = vld [vmem:[#allocation6 + $0x10] sm:$0xff]  ;;  %v66_v7 = vsub.f32 %v60_v2, %v63_v4  ;;  %s159_s1 = scalar_lea.vmem %s98_s7, 384  ;;  %p164_p3 = scmp.lt.s32.totalorder %s98_s7, %s98_s7 }
  0x29   :  { %v67_v8 = vsub.f32 %v61_v5, %v64_v6  ;;  %v68_v9 = vmul.f32 %v65_v3, %v65_v3  ;;  %p160_p2 = scmp.ne.s32.totalorder %s98_s7, %s159_s1  ;;  %p165_p4 = scmp.lt.s32.totalorder %s159_s1, %s159_s1 }
  0x2a   :  { %v69_v10 = vmul.f32 %v66_v7, %v66_v7 }
  0x2b   :  { %v70_v11 = vmul.f32 %v67_v8, %v67_v8  ;;  %89 = vst [vmem:[#allocation8] sm:$0xff] %v68_v9  ;;  %p166_p5 = por %p165_p4, %p164_p3 }
  0x2c   :  { %90 = vst [vmem:[#allocation8 + $0x8] sm:$0xff] %v69_v10 }
  0x2d   :  { %91 = vst [vmem:[#allocation8 + $0x10] sm:$0xff] %v70_v11  ;;  %p167_p6 = pnand %p166_p5, %p160_p2 }
  0x2f   :  { %170 = shalt.err (!%p167_p6)
}
  0x30   :  { %s171_s10 = scalar_lea.hbm %s254_s2, 384 }
  0x31   :  { %p172_p7 = scmp.ne.s32.totalorder %s254_s2, %s171_s10  ;;  %p175_p8 = scmp.lt.u32.totalorder %s171_s10, %s254_s2 }
  0x33   :  { %p177_p9 = pnand %p175_p8, %p172_p7 }
  0x35   :  { %180 = shalt.err (!%p177_p9)
}
  0x36   :  { %103 = dma.vmem_to_hbm [thread:$0]  %s98_s7, 384, %s254_s2, [#allocation5], %s188_s19, %s188_s19, %s189_s20  }
  0x37   :  { %185 = dma.done.wait [#allocation5], 384  }
  0x38   :  { %186 = vsyncadd [#allocation5], 4294966912 }
  0x39   :  { %107 = vsyncpa [#allocation4], 1 }
  0x3a   :  { %108 = vsyncpa [#allocation7], 1 }
  0x3b   :  { %109 = vsyncpa [#allocation5], 1 }

</bundles_post_ra>
